<compile_context>
chip_gen: v5e
topology: v5e:2x2
jax: 0.10.0
libtpu: 0.0.40
codegen_flags: <defaults>
</compile_context>

<pallas_src>
import math
from types import SimpleNamespace

import jax
import jax.numpy as jnp
from jax import lax
from jax.experimental import pallas as pl
from jax.experimental.pallas import tpu as pltpu


# ---------------------------------------------------------------------------
# Stage 1: per-head fused key|query|value 1x1-conv as a row-tiled matmul
# ---------------------------------------------------------------------------
def _proj_head_kernel(x_ref, w_ref, o_ref):
    o_ref[0] = jnp.dot(x_ref[...], w_ref[0],
                       preferred_element_type=jnp.float32).astype(o_ref.dtype)


def project_heads(x_rows, w_heads, out_dtype, row_block=512):
    """x_rows: (R, C) pixel rows; w_heads: (nh, C, Fh). Returns (nh, R, Fh)."""
    R, C = x_rows.shape
    nh, _, Fh = w_heads.shape
    r8 = ((R + 7) // 8) * 8
    if r8 != R:                       # <=7-row pad only; no full-array pad passes
        x_rows = jnp.pad(x_rows, ((0, r8 - R), (0, 0)))
    tm = min(row_block, r8)
    out = pl.pallas_call(
        _proj_head_kernel,
        out_shape=jax.ShapeDtypeStruct((nh, r8, Fh), out_dtype),
        grid_spec=pltpu.PrefetchScalarGridSpec(
            num_scalar_prefetch=0,
            # rows outer / heads inner: the big activation block is resident across
            # the inner head axis, only the tiny weight block is re-fetched.
            grid=(pl.cdiv(r8, tm), nh),
            in_specs=[pl.BlockSpec((tm, C), lambda i, h: (i, 0)),
                      pl.BlockSpec((1, C, Fh), lambda i, h: (h, 0, 0))],
            out_specs=pl.BlockSpec((1, tm, Fh), lambda i, h: (h, i, 0)),
        ),
        compiler_params=pltpu.CompilerParams(
            dimension_semantics=("parallel", "arbitrary")),
    )(x_rows, w_heads)
    return out if r8 == R else out[:, :R]


# ---------------------------------------------------------------------------
# Stage 2: fused cross-attention (both directions) + centering + multi-gaussian MMD
# ---------------------------------------------------------------------------
def _make_attn_mmd_kernel(K, nh, hd, cd, Fh, C, HW, QB, alphas, row_chunk=256):
    N = K * HW
    n_alpha = len(alphas)
    alpha0 = float(alphas[0])
    # alphas = base**k; when base == 2 every bandwidth follows from one exp by squaring
    use_squaring = all(abs(alphas[i + 1] / alphas[i] - 2.0) < 1e-9
                       for i in range(n_alpha - 1))
    dn_nt = (((1,), (1,)), ((), ()))          # X @ Y.T without an explicit transpose

    norm_self = 1.0 / (N * (N - 1))
    norm_cross = -2.0 / (N * N)
    trace = float(N * n_alpha)                # analytic diag kernel sum (d2 diag == 0)

    def softmax(x):
        m = jnp.max(x, axis=-1, keepdims=True)
        e = jnp.exp(x - m)
        return e * pl.reciprocal(jnp.sum(e, axis=-1, keepdims=True), approx=True)

    def gauss_total(d2):
        if use_squaring:
            e = jnp.exp(-alpha0 * d2)         # one EUP exp per matrix
            tot, cur = e, e
            for _ in range(n_alpha - 1):
                cur = cur * cur               # VPU squarings give the other bandwidths
                tot = tot + cur
        else:
            tot = jnp.zeros_like(d2)
            for a in alphas:
                tot = tot + jnp.exp(-float(a) * d2)
        return jnp.sum(tot)

    def pair_sum(xa_ref, xb_ref):
        # Row-blocked: only a (<=row_chunk, N) distance/kernel slab is live at a time.
        xb = xb_ref[...]
        total = 0.0
        start = 0
        while start < N:
            stop = min(start + row_chunk, N)
            d2 = lax.dot_general(xa_ref[start:stop, :], xb, dn_nt,
                                 preferred_element_type=jnp.float32)
            total = total + gauss_total(jnp.maximum(d2, 0.0))
            start = stop
        return total

    def kernel(sp_ref, ss_ref, qp_ref, qs_ref, out_ref, s_scr, q_scr, aug_a, aug_b):
        lane = lax.broadcasted_iota(jnp.int32, (8, 128), 1)
        ones = jnp.ones((N, 1), jnp.float32)
        ss_flat = ss_ref[0, 0].reshape(N, C)          # support shortcut, qi-invariant

        def per_query(qi, slab):
            # ---- fused cross-attention, one head at a time (no broadcast_to) ----
            for h in range(nh):
                sp_h = sp_ref[h, 0, 0]                          # (K, HW, Fh)
                qp_h = qp_ref[h, 0, qi]                         # (HW, Fh)
                sk_h = sp_h[:, :, :hd]                          # support keys
                sq_flat = sp_h[:, :, hd:2 * hd].reshape(N, hd)  # support queries (pre-scaled)
                sv_h = sp_h[:, :, 2 * hd:]                      # support values
                qk_h = qp_h[:, :hd]                             # query keys
                qq_h = qp_h[:, hd:2 * hd]                       # query queries (pre-scaled)
                qv_h = qp_h[:, 2 * hd:]                         # query values

                # query_by_support: all support pixels (all shots) attend over this
                # query image's pixels -> ONE flattened MXU matmul chain per head.
                logit_q = lax.dot_general(sq_flat, qk_h, dn_nt,
                                          preferred_element_type=jnp.float32)   # (N, HW)
                p_q = softmax(logit_q)
                q_scr[:, h * cd:(h + 1) * cd] = jnp.dot(
                    p_q.astype(qv_h.dtype), qv_h, preferred_element_type=jnp.float32)

                # support_by_query: query pixels attend over each shot's support pixels
                # (plain 2-D matmuls; K = k_shot is small).
                for j in range(K):
                    logit_s = lax.dot_general(qq_h, sk_h[j], dn_nt,
                                              preferred_element_type=jnp.float32)  # (HW, HW)
                    p_s = softmax(logit_s)
                    s_scr[j * HW:(j + 1) * HW, h * cd:(h + 1) * cd] = jnp.dot(
                        p_s.astype(sv_h.dtype), sv_h[j],
                        preferred_element_type=jnp.float32)

            # ---- residual shortcut + channel centering (f32) --------------------
            S = s_scr[...] + ss_flat                                          # (N, C)
            Q = (q_scr[...].reshape(K, HW, C) + qs_ref[0, qi][None]).reshape(N, C)
            S = S - jnp.mean(S, axis=-1, keepdims=True)
            Q = Q - jnp.mean(Q, axis=-1, keepdims=True)
            s2 = jnp.sum(S * S, axis=-1, keepdims=True)                       # (N, 1)
            q2 = jnp.sum(Q * Q, axis=-1, keepdims=True)

            # ---- augmented-gram distances: d2 = Xa_aug @ Xb_aug.T in ONE matmul;
            # the -2 factor and squared norms are folded into the MXU contraction,
            # the (N, C+2) operands live in small VMEM scratches (f32 accumulation).
            aug_a[:, :C] = -2.0 * S
            aug_a[:, C:C + 1] = s2
            aug_a[:, C + 1:C + 2] = ones
            aug_b[:, :C] = S
            aug_b[:, C:C + 1] = ones
            aug_b[:, C + 1:C + 2] = s2
            t_ss = pair_sum(aug_a, aug_b)            # support vs support
            aug_b[:, :C] = Q
            aug_b[:, C + 1:C + 2] = q2               # its ones column persists
            t_sq = pair_sum(aug_a, aug_b)            # support vs query
            aug_a[:, :C] = -2.0 * Q
            aug_a[:, C:C + 1] = q2                   # its ones column persists
            t_qq = pair_sum(aug_a, aug_b)            # query vs query

            mmd = (norm_self * (t_ss - trace)
                   + norm_self * (t_qq - trace)
                   + norm_cross * t_sq)
            return jnp.where(lane == qi, mmd, slab)

        slab = lax.fori_loop(0, QB, per_query, jnp.zeros((8, 128), jnp.float32))
        out_ref[0, 0, 0] = slab

    return kernel


def attn_mmd_distance(sproj, s_short, qproj, q_short, *, head_dim, alphas, q_block=None):
    nh, b, n_way, K, HW, Fh = sproj.shape
    C = s_short.shape[-1]
    q = qproj.shape[2]
    hd = head_dim
    cd = C // nh
    assert Fh == 2 * hd + cd

    if q_block is None:
        QB = next(d for d in (8, 4, 2, 1) if q % d == 0)
    else:
        QB = q_block
        assert q % QB == 0
    n_qb = q // QB
    N = K * HW

    kernel = _make_attn_mmd_kernel(K, nh, hd, cd, Fh, C, HW, QB, alphas)

    # Keep the LARGER of {support block, query block} resident across the innermost
    # grid axis so the bigger operand is never re-DMA'd (for 1-shot the query block
    # usually dominates).
    sup_bytes = K * HW * (nh * Fh * sproj.dtype.itemsize + C * s_short.dtype.itemsize)
    qry_bytes = QB * HW * (nh * Fh * qproj.dtype.itemsize + C * q_short.dtype.itemsize)
    support_inner = sup_bytes >= qry_bytes

    def idx_sproj(bi, wi, qb): return (0, bi, wi, 0, 0, 0)
    def idx_ss(bi, wi, qb):    return (bi, wi, 0, 0, 0)
    def idx_qproj(bi, wi, qb): return (0, bi, qb, 0, 0)
    def idx_qs(bi, wi, qb):    return (bi, qb, 0, 0)
    def idx_out(bi, wi, qb):   return (bi, wi, qb, 0, 0)

    if support_inner:
        grid = (b, n_way, n_qb)

        def wrap(f):
            return lambda bi, wi, qb: f(bi, wi, qb)
    else:
        grid = (b, n_qb, n_way)

        def wrap(f):
            return lambda bi, qb, wi: f(bi, wi, qb)

    # TODO(synk): on v7x (64 MiB VMEM), also set pipeline_mode=pl.Buffered(1) on the
    # innermost-resident specs and cast the shortcut inputs to bf16 if blocks grow.
    out = pl.pallas_call(
        kernel,
        out_shape=jax.ShapeDtypeStruct((b, n_way, n_qb, 8, 128), jnp.float32),
        grid_spec=pltpu.PrefetchScalarGridSpec(
            num_scalar_prefetch=0,
            grid=grid,
            in_specs=[
                pl.BlockSpec((nh, 1, 1, K, HW, Fh), wrap(idx_sproj)),
                pl.BlockSpec((1, 1, K, HW, C),      wrap(idx_ss)),
                pl.BlockSpec((nh, 1, QB, HW, Fh),   wrap(idx_qproj)),
                pl.BlockSpec((1, QB, HW, C),        wrap(idx_qs)),
            ],
            out_specs=pl.BlockSpec((1, 1, 1, 8, 128), wrap(idx_out)),
            scratch_shapes=[
                pltpu.VMEM((N, C), jnp.float32),        # attended support features
                pltpu.VMEM((N, C), jnp.float32),        # attended query-direction features
                pltpu.VMEM((N, C + 2), jnp.float32),    # augmented gram operand A
                pltpu.VMEM((N, C + 2), jnp.float32),    # augmented gram operand B
            ],
        ),
        compiler_params=pltpu.CompilerParams(
            dimension_semantics=("parallel", "parallel", "arbitrary"),
            vmem_limit_bytes=40 * 1024 * 1024),
    )(sproj, s_short, qproj, q_short)

    mmd = out[:, :, :, 0, :QB].reshape(b, n_way, q)   # lane qi of block qb = query qb*QB+qi
    return jnp.transpose(mmd, (0, 2, 1))              # (b, q, n_way)


# ---------------------------------------------------------------------------
# Module wrapper (plain-JAX glue: layout, parameters, loss)
# ---------------------------------------------------------------------------
class MMDPallas:
    def __init__(self, in_channels, cfg, loss='crossentropy', kernel='gaussian',
                 key=jax.random.PRNGKey(0), use_bf16_matmul=True):
        assert kernel == 'gaussian'
        self.n_way = cfg.n_way
        self.k_shot = cfg.k_shot
        self.loss = loss
        self.temperature = cfg.model.temperature
        self.alphas = [float(cfg.model.mmd.alphas) ** k for k in range(-3, 2)]
        self.feat_dim = in_channels
        self.proj_dim = cfg.model.mmd.proj_dim
        self.head_dim = 32
        self.num_head = self.proj_dim // self.head_dim
        self.scale = (self.proj_dim // self.num_head) ** 0.5
        # bf16 MXU operands (f32 accumulation) for stage 1 and the attention matmuls;
        # the gram/MMD math stays f32.  On v5e (no bf16 VPU/EUP) the extra converts are
        # pure VPU filler -> pass use_bf16_matmul=False there if VPU-bound.
        self.mm_dtype = jnp.bfloat16 if use_bf16_matmul else jnp.float32

        kk, kq, kv = jax.random.split(key, 3)
        # Conv2d(feat, out, 1, bias=False): init N(0, sqrt(2/out))
        wk = jax.random.normal(kk, (self.proj_dim, self.feat_dim), jnp.float32) * math.sqrt(2.0 / self.proj_dim)
        wq = jax.random.normal(kq, (self.proj_dim, self.feat_dim), jnp.float32) * math.sqrt(2.0 / self.proj_dim)
        wv = jax.random.normal(kv, (self.feat_dim, self.feat_dim), jnp.float32) * math.sqrt(2.0 / self.feat_dim)

        hd = self.head_dim
        cd = self.feat_dim // self.num_head
        heads = []
        for h in range(self.num_head):
            heads.append(jnp.concatenate(
                [wk[h * hd:(h + 1) * hd].T,
                 wq[h * hd:(h + 1) * hd].T / self.scale,   # 1/scale folded in
                 wv[h * cd:(h + 1) * cd].T], axis=1))      # (C, Fh)
        # head-leading fused weight (nh, C, Fh); bf16 stage-1 MXU operands.
        self.w_heads = jnp.stack(heads, axis=0).astype(self.mm_dtype)
        self.cd = cd
        self.f_head = 2 * hd + cd

    def forward(self, support_xf, support_y, query_xf, query_y, training=True):
        b, q, c, h, w = query_xf.shape
        s = support_xf.shape[1]
        assert s == self.n_way * self.k_shot
        HW = h * w
        Fh = self.f_head

        # single NCHW -> channels-last layout change; everything downstream stays
        # channels-last (heads are selected with a leading-dim index in stage 2).
        xs = jnp.transpose(support_xf.reshape(b * s, c, HW), (0, 2, 1)).astype(jnp.float32)
        xq = jnp.transpose(query_xf.reshape(b * q, c, HW), (0, 2, 1)).astype(jnp.float32)

        # stage 1: two independent bf16 row-tiled matmuls (no concat / pad / slice passes)
        sproj = project_heads(xs.reshape(b * s * HW, c).astype(self.mm_dtype),
                              self.w_heads, self.mm_dtype)
        qproj = project_heads(xq.reshape(b * q * HW, c).astype(self.mm_dtype),
                              self.w_heads, self.mm_dtype)
        sproj = sproj.reshape(self.num_head, b, self.n_way, self.k_shot, HW, Fh)
        qproj = qproj.reshape(self.num_head, b, q, HW, Fh)
        s_short = xs.reshape(b, self.n_way, self.k_shot, HW, c)
        q_short = xq.reshape(b, q, HW, c)

        mmd_dis = attn_mmd_distance(sproj, s_short, qproj, q_short,
                                    head_dim=self.head_dim,
                                    alphas=self.alphas)            # (b, q, n_way)

        mmd_flat = mmd_dis.reshape(b * q, -1)
        labels = query_y.reshape(b * q)
        if training:
            logits = -mmd_flat / self.temperature
            logz = jax.nn.logsumexp(logits, axis=-1)
            nll = logz - jnp.take_along_axis(logits, labels[:, None], axis=-1)[:, 0]
            return {'MMD_loss': jnp.mean(nll), 'mmd_dis': mmd_flat}
        else:
            pred = jnp.argmin(mmd_flat, axis=1)
            return (pred == labels).astype(jnp.int32)


if __name__ == "__main__":
    cfg = SimpleNamespace(
        n_way=2, k_shot=1,
        model=SimpleNamespace(
            temperature=2.0, tri_thres=0.5,
            mmd=SimpleNamespace(l2norm=False, alphas=2.0, proj_dim=64)))

    b, n_way, k_shot, q = 2, cfg.n_way, cfg.k_shot, 2
    c, h, w = 64, 4, 4
    s = n_way * k_shot

    key = jax.random.PRNGKey(0)
    k1, k2, k3, k4 = jax.random.split(key, 4)
    support_xf = jax.random.normal(k1, (b, s, c, h, w), jnp.float32)
    query_xf = jax.random.normal(k2, (b, q, c, h, w), jnp.float32)
    support_y = jnp.tile(jnp.arange(n_way).repeat(k_shot)[None, :], (b, 1))
    query_y = jax.random.randint(k3, (b, q), 0, n_way)

    model = MMDPallas(in_channels=c, cfg=cfg, loss='crossentropy',
                      kernel='gaussian', key=k4)
    out = model.forward(support_xf, support_y, query_xf, query_y, training=True)
    jax.block_until_ready(out['MMD_loss'])
    jax.block_until_ready(out['mmd_dis'])
    print("KERNEL_OK")
</pallas_src>

<mosaic_0001>
module attributes {stable_mosaic.version = 11 : i64} {
  func.func @_proj_head_kernel(%arg0: i32, %arg1: i32, %arg2: memref<64x64xbf16, #tpu.memory_space<vmem>>, %arg3: memref<1x64x96xbf16, #tpu.memory_space<vmem>>, %arg4: memref<1x64x96xbf16, #tpu.memory_space<vmem>>) attributes {dimension_semantics = [#tpu.dimension_semantics<parallel>, #tpu.dimension_semantics<arbitrary>], iteration_bounds = array<i64: 1, 2>, scalar_prefetch = 0 : i64, scratch_operands = 0 : i64, tpu.core_type = #tpu.core_type<tc>, window_params = [{transform_indices = @transform_0, window_bounds = array<i64: 64, 64>}, {transform_indices = @transform_1, window_bounds = array<i64: 1, 64, 96>}, {transform_indices = @transform_2, window_bounds = array<i64: 1, 64, 96>}]} {
    %c0 = arith.constant 0 : index
    %c0_0 = arith.constant 0 : index
    %0 = vector.load %arg2[%c0, %c0_0] : memref<64x64xbf16, #tpu.memory_space<vmem>>, vector<64x64xbf16>
    %c0_1 = arith.constant 0 : index
    %c0_2 = arith.constant 0 : index
    %c0_3 = arith.constant 0 : index
    %1 = vector.load %arg3[%c0_1, %c0_2, %c0_3] : memref<1x64x96xbf16, #tpu.memory_space<vmem>>, vector<1x64x96xbf16>
    %2 = vector.shape_cast %1 : vector<1x64x96xbf16> to vector<64x96xbf16>
    %cst = arith.constant dense<0.000000e+00> : vector<64x96xf32>
    %3 = tpu.matmul %0, %2, %cst {dimension_numbers = #tpu.dot_dimension_numbers<[1], [0], [0], [1], [0, 0, 1, 1], [], []>} : vector<64x64xbf16>, vector<64x96xbf16>, vector<64x96xf32> -> vector<64x96xf32>
    %4 = arith.truncf %3 : vector<64x96xf32> to vector<64x96xbf16>
    %c0_4 = arith.constant 0 : index
    %c0_5 = arith.constant 0 : index
    %c0_6 = arith.constant 0 : index
    %5 = vector.load %arg4[%c0_4, %c0_5, %c0_6] : memref<1x64x96xbf16, #tpu.memory_space<vmem>>, vector<1x64x96xbf16>
    %6 = vector.shape_cast %5 : vector<1x64x96xbf16> to vector<64x96xbf16>
    %7 = vector.shape_cast %4 : vector<64x96xbf16> to vector<1x64x96xbf16>
    tpu.vector_store %arg4[%c0_4, %c0_5, %c0_6], %7 {strides = array<i32>} : memref<1x64x96xbf16, #tpu.memory_space<vmem>>, vector<1x64x96xbf16>,
    return
  }
  func.func @transform_0(%arg0: i32, %arg1: i32) -> (i32, i32) {
    %c0_i32 = arith.constant 0 : i32
    %c0_i32_0 = arith.constant 0 : i32
    return %arg0, %c0_i32 : i32, i32
  }
  func.func @transform_1(%arg0: i32, %arg1: i32) -> (i32, i32, i32) {
    %c0_i32 = arith.constant 0 : i32
    %c0_i32_0 = arith.constant 0 : i32
    %c0_i32_1 = arith.constant 0 : i32
    return %arg1, %c0_i32, %c0_i32_0 : i32, i32, i32
  }
  func.func @transform_2(%arg0: i32, %arg1: i32) -> (i32, i32, i32) {
    %c0_i32 = arith.constant 0 : i32
    %c0_i32_0 = arith.constant 0 : i32
    return %arg1, %arg0, %c0_i32 : i32, i32, i32
  }
}

</mosaic_0001>

<bundles_post_ra>
// kernel: tpu_custom_call.1
= control target key start
LH: loop header
LB: loop body
LE: loop exit
PB: predicated region body
PF: predicated region fallthrough
CT: control target
= control target key end

     0   :  { %7 = vsyncpa [#allocation3], 0  ;;  %s928_s0 = inlined_call_operand.hbm [shape: bf16[64,64], index: 0, kind: input, shape index: {}]   ;;  %s929_s1 = inlined_call_operand.hbm [shape: bf16[2,64,96], index: 1, kind: input, shape index: {}]   ;;  %s930_s2 = inlined_call_operand.hbm [shape: bf16[2,64,96], index: 2, kind: output, shape index: {}]  }
   0x1   :  { %8 = vsyncpa [#allocation6], 0 }
   0x2   :  { %10 = vsyncpa [#allocation6 + $0x1], 0 }
   0x3   :  { %11 = vsyncpa [#allocation4], 0 }
   0x4   :  { %13 = vsyncpa [#allocation4 + $0x1], 0  ;;  %s761_s9 = smov 0   ;;  %s763_s10 = smov 0  }
   0x5   :  { %s765_s11 = smov 0   ;;  %s767_s12 = smov 0  }
   0x6   :  { %s769_s13 = smov 0   ;;  %s771_s14 = smov 0  }
   0x7 LB: > { %s441_s15 = sadd.s32 4294967295, %s739_s14   ;;  %s442_s16 = sadd.s32 4294967294, %s739_s14   ;;  %s739_s14 = sphi %s771_s14, %s19_s14   ;;  %s735_s13 = sphi %s769_s13, %s942_s13   ;;  %s731_s12 = sphi %s767_s12, %s941_s12   ;;  %s727_s11 = sphi %s765_s11, %s940_s11   ;;  %s723_s10 = sphi %s763_s10, %s939_s10   ;;  %s719_s9 = sphi %s761_s9, %s938_s9  }
   0x8   : > { %p77_p0 = scmp.ne.s32.totalorder %s723_s10, %s719_s9  ;;  %p795_p1 = scmp.eq.s32.totalorder %s441_s15, 0 }
   0x9   : > { %p799_p2 = scmp.eq.s32.totalorder %s441_s15, 1  ;;  %p109_p3 = scmp.eq.s32.totalorder %s442_s16, 1 }
   0xa   : > { %p805_p4 = por %p795_p1, %p77_p0  ;;  %p443_p5 = scmp.ge.s32.totalorder %s739_s14, 1 }
   0xb   : > { %p810_p6 = por %p109_p3, %p77_p0  ;;  %p116_p7 = scmp.lt.s32.totalorder %s739_s14, 3 }
   0xc   : > { %s130_s23 = sshll.u32 %s928_s0, 4  ;;  %s741_s25 = smov [#allocation2]   ;;  %s131_s23 = int_to_ptr.hbm [resolvable:$true] %s130_s23 }
   0xd   : > { %p818_p8 = pnand %p443_p5, %p116_p7  ;;  %s132_s26 = sshll.u32 %s741_s25, 4  ;;  %s133_s26 = int_to_ptr.vmem [resolvable:$true] %s132_s26 }
   0xe   : > { %p445_p11 = scmp.ge.s32.totalorder %s739_s14, 2  ;;  %s742_s27 = smov 64  }
   0xf   : > { %p524_p9 = pneg %p818_p8  ;;  %s743_s28 = smov 4  }
  0x10   : > { %s28_s29 = sadd.s32 1, %s735_s13  ;;  %s64_s30 = sadd.s32 1, %s727_s11 }
  0x11   : > { %p525_p10 = pnand %p524_p9, %p795_p1  ;;  %p29_p12 = scmp.ge.s32.totalorder %s28_s29, 2 }
  0x12   : > { %p71_p13 = scmp.ne.s32.totalorder %s727_s11, %s723_s10  ;;  %p72_p0 = scmp.eq.s32.totalorder %s739_s14, 0 }
  0x13   : > { %527 = dma.hbm_to_vmem [thread:$0]  (!%p525_p10), %s131_s23, 512, %s133_s26, [#allocation3], %s742_s27, %s742_s27, %s743_s28  }
  0x14   : > { %s944_s29 = smov (%p29_p12, %s28_s29), 0  ;;  %p837_p3 = por %p72_p0, %p71_p13 }
  0x15   : > { %p843_p5 = por %p799_p2, %p71_p13  ;;  %s61_s5 = ssub.s32 %s735_s13, %s944_s29 }
  0x16   : > { %p537_p7 = scmp.lt.s32.totalorder %s739_s14, 2  ;;  %p62_p9 = scmp.eq.s32.totalorder %s61_s5, 0 }
  0x17   : > { %s146_s6 = sand.u32 1, %s727_s11   ;;  %s494_s15 = sshll.u32 %s735_s13, 5 }
  0x18   : > { %s446_s7 = sshll.u32 %s146_s6, 5  ;;  %s155_s22 = scalar_lea.hbm %s929_s1, %s494_s15 }
  0x19   : > { %s852_s8 = scalar_select %p62_p9, %s727_s11, %s64_s30  }
  0x1a   : > { %s150_s23 = scalar_lea.vmem [#allocation5], %s446_s7  ;;  %s156_s18 = sshll.u32 %s155_s22, 4  ;;  %s157_s18 = int_to_ptr.hbm [resolvable:$true] %s156_s18 }
  0x1b   : > { %s158_s25 = sshll.u32 %s150_s23, 4  ;;  %p529_p2 = pnand %p537_p7, %p837_p3  ;;  %s159_s25 = int_to_ptr.vmem [resolvable:$true] %s158_s25 }
  0x1c   : > { %s147_s26 = scalar_lea.sflag [#allocation6], %s146_s6  ;;  %170 = sbr.rel (%p818_p8) target bundleno = 202 (0xca), region = 28 }
  0x1d   : > { %531 = dma.hbm_to_vmem [thread:$0]  (!%p529_p2), %s157_s18, 512, %s159_s25, %s147_s26, %s742_s27, %s742_s27, %s743_s28  }
  0x21   : > { %706 = dma.done.wait (%p795_p1), [#allocation3], 512  }
  0x22   : > { %708 = vsyncadd (%p795_p1), [#allocation3], 4294966784  ;;  %s870_s30 = sand.u32 1, %s723_s10  }
  0x23   : > { %s451_s3 = sshll.u32 %s870_s30, 5  ;;  %s178_s5 = scalar_lea.sflag [#allocation6], %s870_s30 }
  0x24   : > { %s181_s27 = scalar_lea.vmem [#allocation5], %s451_s3 }
  0x25   : > { %710 = dma.done.wait (%p805_p4), %s178_s5, 512  }
  0x26   : > { %712 = vsyncadd (%p805_p4), %s178_s5, 4294966784  ;;  %v502_v0 = vld [vmem:[%s181_s27 + $0x18] sm:$0xff]  ;;  %v501_v1 = vld [vmem:[%s181_s27 + $0x10] sm:$0xff]  ;;  %vm266_vm0 = vcmask 523264   ;;  %vm316_vm1 = vcmask 781312   ;;  %s202_s17 = scalar_lea.vmem [#allocation7], %s451_s3 }
  0x27   : > { %283 = vmatpush.bf16.msra.mxu0 %v502_v0  ;;  %504 = vmatpush.bf16.msra.mxu1 %v502_v0  ;;  %v500_v2 = vld [vmem:[%s181_s27 + $0x8] sm:$0xff]  ;;  %v499_v3 = vld [vmem:[%s181_s27] sm:$0xff]  ;;  %v497_v6 = vld [vmem:[#allocation2 + $0x10] sm:$0xff]  ;;  %s503_s19 = sshll.u32 %s731_s12, 5  ;;  %s340_s12 = sshll.u32 %s202_s17, 4  ;;  %s341_s12 = int_to_ptr.vmem [resolvable:$true] %s340_s12 }
  0x28   : > { %505 = vmatpush.bf16.msra.mxu2 %v502_v0  ;;  %506 = vmatpush.bf16.msra.mxu3 %v502_v0  ;;  %v495_v4 = vld [vmem:[#allocation2] sm:$0xff]  ;;  %v496_v5 = vld [vmem:[#allocation2 + $0x8] sm:$0xff]  ;;  %v498_v7 = vld [vmem:[#allocation2 + $0x18] sm:$0xff]  ;;  %s339_s6 = scalar_lea.hbm %s930_s2, %s503_s19  ;;  %s326_s15 = scalar_lea.sflag [#allocation4], %s870_s30 }
  0x29   : > { %s342_s7 = sshll.u32 %s339_s6, 4  ;;  %s673_s25 = scalar_lea.hbm %s930_s2, 64  ;;  %s343_s7 = int_to_ptr.hbm [resolvable:$true] %s342_s7 }
  0x2a   : > { %s667_s16 = sshra.s32 %s343_s7, 4  ;;  %s668_s16 = int_to_ptr.hbm [resolvable:$true] %s667_s16 }
  0x2b   : > { %284 = vmatpush.bf16.msra.mxu0 %v501_v1  ;;  %507 = vmatpush.bf16.msra.mxu1 %v501_v1  ;;  %s669_s21 = scalar_lea.hbm %s668_s16, 32  ;;  %p674_p10 = scmp.lt.s32.totalorder %s668_s16, %s930_s2 }
  0x2c   : > { %508 = vmatpush.bf16.msra.mxu2 %v501_v1  ;;  %509 = vmatpush.bf16.msra.mxu3 %v501_v1  ;;  %p670_p1 = scmp.ne.s32.totalorder %s668_s16, %s669_s21  ;;  %p675_p12 = scmp.lt.s32.totalorder %s673_s25, %s669_s21 }
  0x2e   : > { %p671_p4 = pnand %p670_p1, %p843_p5  ;;  %p676_p13 = por %p675_p12, %p674_p10 }
  0x2f   : > { %285 = vmatpush.bf16.msra.mxu0 %v500_v2  ;;  %510 = vmatpush.bf16.msra.mxu1 %v500_v2 }
  0x30   : > { %511 = vmatpush.bf16.msra.mxu2 %v500_v2  ;;  %512 = vmatpush.bf16.msra.mxu3 %v500_v2  ;;  %p672_p8 = pneg %p671_p4 }
  0x32   : > { %p677_p0 = pnand %p676_p13, %p672_p8 }
  0x33   : > { %286 = vmatpush.bf16.msra.mxu0 %v499_v3  ;;  %513 = vmatpush.bf16.msra.mxu1 %v499_v3 }
  0x34   : > { %514 = vmatpush.bf16.msra.mxu2 %v499_v3  ;;  %515 = vmatpush.bf16.msra.mxu3 %v499_v3 }
  0x36   : > { %485 = vmatmul.msk.bf16.vlgmr.msra.gmra.mxu0 %vm266_vm0, %v495_v4  ;;  %486 = vmatmul.msk.bf16.vlgmr.msra.gmra.mxu1 %vm266_vm0, %v496_v5 }
  0x37   : > { %487 = vmatmul.msk.bf16.vlgmr.msra.gmra.mxu2 %vm266_vm0, %v497_v6  ;;  %488 = vmatmul.msk.bf16.vlgmr.msra.gmra.mxu3 %vm266_vm0, %v498_v7 }
  0xb3   : > { %v288_v8 = vpop.f32.mrf.mxu0  ;;  %v293_v9 = vpop.f32.mrf.mxu1 }
  0xb4   : > { %v308_v10 = vpack.c.bf16 %v288_v8, %v288_v8  ;;  %v310_v11 = vpack.c.bf16 %v293_v9, %v293_v9 }
  0xb6   : > { %317 = vst.msk [vmem:[%s202_s17] sm:$0xf] %vm316_vm1, %v308_v10 }
  0xb7   : > { %319 = vst.msk [vmem:[%s202_s17 + $0x8] sm:$0xf] %vm316_vm1, %v310_v11 }
  0xba   : > { %v298_v12 = vpop.f32.mrf.mxu2  ;;  %v303_v13 = vpop.f32.mrf.mxu3 }
  0xbb   : > { %v312_v14 = vpack.c.bf16 %v298_v12, %v298_v12  ;;  %v314_v15 = vpack.c.bf16 %v303_v13, %v303_v13  ;;  %v290_v16 = vpop.f32.mrf.mxu0  ;;  %v295_v17 = vpop.f32.mrf.mxu1 }
  0xbc   : > { %v309_v18 = vpack.c.bf16 %v290_v16, %v290_v16  ;;  %v311_v19 = vpack.c.bf16 %v295_v17, %v295_v17 }
  0xbd   : > { %321 = vst.msk [vmem:[%s202_s17 + $0x10] sm:$0xf] %vm316_vm1, %v312_v14 }
  0xbe   : > { %323 = vst.msk [vmem:[%s202_s17 + $0x18] sm:$0xf] %vm316_vm1, %v314_v15 }
  0xbf   : > { %318 = vst.msk [vmem:[%s202_s17 + $0x4] sm:$0xf] %vm316_vm1, %v309_v18 }
  0xc0   : > { %320 = vst.msk [vmem:[%s202_s17 + $0xc] sm:$0xf] %vm316_vm1, %v311_v19 }
  0xc2   : > { %v300_v20 = vpop.f32.mrf.mxu2  ;;  %v305_v21 = vpop.f32.mrf.mxu3 }
  0xc3   : > { %v313_v22 = vpack.c.bf16 %v300_v20, %v300_v20  ;;  %v315_v23 = vpack.c.bf16 %v305_v21, %v305_v21 }
  0xc5   : > { %322 = vst.msk [vmem:[%s202_s17 + $0x14] sm:$0xf] %vm316_vm1, %v313_v22 }
  0xc6   : > { %324 = vst.msk [vmem:[%s202_s17 + $0x1c] sm:$0xf] %vm316_vm1, %v315_v23 }
  0xc7   : > { %680 = shalt.err (!%p677_p0)
}
  0xc8   : > { %s744_s30 = smov 64   ;;  %s745_s3 = smov 4  }
  0xc9   : > { %522 = dma.vmem_to_hbm [thread:$0]  (%p843_p5), %s341_s12, 512, %s343_s7, %s326_s15, %s744_s30, %s744_s30, %s745_s3  }
  0xca PF: > { %s357_s5 = sand.u32 1, %s719_s9   ;;  %p533_p3 = pnand %p445_p11, %p810_p6 }
  0xcb   : > { %s358_s27 = scalar_lea.sflag [#allocation4], %s357_s5 }
  0xcc   : > { %p534_p7 = pneg %p533_p3 }
  0xce   : > { %714 = dma.done.wait (%p534_p7), %s358_s27, 512  }
  0xcf   : > { %716 = vsyncadd (%p534_p7), %s358_s27, 4294966784  ;;  %s19_s14 = sadd.s32 1, %s739_s14   ;;  %s938_s9 = smov %s723_s10 }
  0xd0   : > { %p16_p9 = scmp.ge.s32.totalorder %s19_s14, 4   ;;  %s939_s10 = smov %s727_s11 }
  0xd1   : > { %s940_s11 = smov %s852_s8  ;;  %s941_s12 = smov %s735_s13 }
  0xd2   : > { %s942_s13 = smov %s944_s29  ;;  %18 = sbr.rel (!%p16_p9) target bundleno = 7 (0x7), region = 79 }
  0xd7   :  { %364 = vsyncpa [#allocation3], 1 }
  0xd8   :  { %366 = vsyncpa [#allocation3 + $0x1], 1 }
  0xd9   :  { %367 = vsyncpa [#allocation6], 1 }
  0xda   :  { %369 = vsyncpa [#allocation6 + $0x1], 1 }
  0xdb   :  { %370 = vsyncpa [#allocation4], 1 }
  0xdc   :  { %372 = vsyncpa [#allocation4 + $0x1], 1 }

</bundles_post_ra>
